<compile_context>
chip_gen: v7x
topology: tpu7x:2x2x1
jax: 0.10.0
libtpu: 0.0.40
codegen_flags: <defaults>
</compile_context>

<pallas_src>
import functools

import jax
import jax.numpy as jnp
from jax.experimental import pallas as pl
from jax.experimental.pallas import tpu as pltpu


def _tv_kernel(x_ref, h_out_ref, w_out_ref, h_acc, w_acc, *,
               n_slices, block_slices):
    # x_ref:     (TB, H, W) input tile (VMEM).
    # h_out_ref: (1, 1) SMEM per-core partial sum of vertical squared diffs.
    # w_out_ref: (1, 1) SMEM per-core partial sum of horizontal squared diffs.
    # h_acc:     (H-1, W) f32 VMEM accumulator (per core).
    # w_acc:     (H, W-1) f32 VMEM accumulator (per core).
    i = pl.program_id(1)
    steps = pl.num_programs(1)

    @pl.when(i == 0)
    def _init():
        h_acc[...] = jnp.zeros_like(h_acc)
        w_acc[...] = jnp.zeros_like(w_acc)

    x = x_ref[...].astype(jnp.float32)            # (TB, H, W)

    if n_slices % block_slices != 0:
        # Static branch: only emitted when the last block is clipped. Zero the
        # out-of-range (undefined) slices so they contribute nothing. Diffs
        # never cross slices, so zeroed slices add exactly 0 to both sums.
        c = pl.program_id(0)
        start = (c * steps + i) * block_slices
        slice_ids = start + jax.lax.broadcasted_iota(jnp.int32, x.shape, 0)
        x = jnp.where(slice_ids < n_slices, x, 0.0)

    dh = x[:, 1:, :] - x[:, :-1, :]               # vertical (height) diffs
    dw = x[:, :, 1:] - x[:, :, :-1]               # horizontal (width) diffs

    # Reduce only the leading block axis per step (element-wise vreg adds on
    # the VPU); the cross-lane reduction happens once per core, below.
    h_acc[...] += jnp.sum(dh * dh, axis=0)
    w_acc[...] += jnp.sum(dw * dw, axis=0)

    @pl.when(i == steps - 1)
    def _finalize():
        h_out_ref[0, 0] = jnp.sum(h_acc[...])
        w_out_ref[0, 0] = jnp.sum(w_acc[...])


def tv_loss(x, tv_loss_weight: float = 1.0, *,
            target_block_bytes: int = 2 * 1024 * 1024,
            max_cores: int = 2):
    """Total variation loss matching the PyTorch TVLoss.forward semantics."""
    B, C, H, W = x.shape
    assert H >= 2 and W >= 2, "TV loss needs H >= 2 and W >= 2"
    N = B * C
    xf = x.reshape(N, H, W)

    # ---- tiling: big blocks sized for VMEM / near-HBM-roofline streaming ----
    itemsize = jnp.dtype(xf.dtype).itemsize
    slice_bytes = H * W * itemsize
    tb = int(max(1, min(N, target_block_bytes // max(slice_bytes, 1))))
    n_blocks = int(pl.cdiv(N, tb))
    # Split blocks across TensorCores when it divides evenly (v7x has 2 TCs;
    # on v5e/v6e a size-2 "parallel" axis simply runs sequentially).
    nc = max_cores if (max_cores > 1 and n_blocks % max_cores == 0) else 1
    steps = n_blocks // nc

    kernel = functools.partial(_tv_kernel, n_slices=N, block_slices=tb)

    h_out, w_out = pl.pallas_call(
        kernel,
        out_shape=(
            jax.ShapeDtypeStruct((nc, 1), jnp.float32),
            jax.ShapeDtypeStruct((nc, 1), jnp.float32),
        ),
        grid_spec=pltpu.PrefetchScalarGridSpec(
            num_scalar_prefetch=0,
            grid=(nc, steps),
            in_specs=[
                pl.BlockSpec((tb, H, W), lambda c, i: (c * steps + i, 0, 0)),
            ],
            out_specs=(
                pl.BlockSpec((1, 1), lambda c, i: (c, 0),
                             memory_space=pltpu.SMEM),
                pl.BlockSpec((1, 1), lambda c, i: (c, 0),
                             memory_space=pltpu.SMEM),
            ),
            scratch_shapes=[
                pltpu.VMEM((H - 1, W), jnp.float32),
                pltpu.VMEM((H, W - 1), jnp.float32),
            ],
        ),
        compiler_params=pltpu.CompilerParams(
            # Per-core partial outputs -> no shared-accumulator race on the
            # parallel axis; the inner axis accumulates sequentially.
            dimension_semantics=("parallel", "arbitrary"),
            vmem_limit_bytes=32 * 1024 * 1024,
        ),
        cost_estimate=pl.CostEstimate(
            flops=6 * N * H * W,
            transcendentals=0,
            bytes_accessed=N * H * W * itemsize,
        ),
    )(xf)

    h_tv = jnp.sum(h_out)   # sum the (tiny) per-core partials
    w_tv = jnp.sum(w_out)

    count_h = C * (H - 1) * W
    count_w = C * H * (W - 1)
    return tv_loss_weight * 2.0 * (h_tv / count_h + w_tv / count_w) / B


def tv_loss_ref(x, tv_loss_weight: float = 1.0):
    """Plain-JAX reference (mirrors the PyTorch code)."""
    B, C, H, W = x.shape
    count_h = C * (H - 1) * W
    count_w = C * H * (W - 1)
    h_tv = jnp.sum((x[:, :, 1:, :] - x[:, :, :H - 1, :]) ** 2)
    w_tv = jnp.sum((x[:, :, :, 1:] - x[:, :, :, :W - 1]) ** 2)
    return tv_loss_weight * 2.0 * (h_tv / count_h + w_tv / count_w) / B


if __name__ == "__main__":
    # Primary small-shape check (module-consistent shape).
    key = jax.random.PRNGKey(0)
    x = jax.random.normal(key, (2, 4, 16, 16), dtype=jnp.float32)
    out = jax.block_until_ready(tv_loss(x))
    ref = jax.block_until_ready(tv_loss_ref(x))
    assert jnp.allclose(out, ref, rtol=1e-5, atol=1e-5), (out, ref)

    # Exercise multi-block accumulation + 2-way core split (tiny blocks forced).
    x2 = jax.random.normal(jax.random.PRNGKey(1), (2, 4, 32, 32), jnp.float32)
    out2 = jax.block_until_ready(tv_loss(x2, target_block_bytes=8 * 1024))
    ref2 = jax.block_until_ready(tv_loss_ref(x2))
    assert jnp.allclose(out2, ref2, rtol=1e-5, atol=1e-5), (out2, ref2)

    # Exercise the ragged-tail (clipped last block) masking path.
    x3 = jax.random.normal(jax.random.PRNGKey(2), (3, 3, 16, 16), jnp.float32)
    out3 = jax.block_until_ready(tv_loss(x3, target_block_bytes=4 * 1024))
    ref3 = jax.block_until_ready(tv_loss_ref(x3))
    assert jnp.allclose(out3, ref3, rtol=1e-5, atol=1e-5), (out3, ref3)

    print("KERNEL_OK")
</pallas_src>

<mosaic_0001>
module attributes {stable_mosaic.version = 11 : i64} {
  func.func @_tv_kernel(%arg0: i32, %arg1: i32, %arg2: memref<8x16x16xf32, #tpu.memory_space<vmem>>, %arg3: memref<1x1xf32, #tpu.memory_space<smem>>, %arg4: memref<1x1xf32, #tpu.memory_space<smem>>, %arg5: memref<15x16xf32, #tpu.memory_space<vmem>>, %arg6: memref<16x15xf32, #tpu.memory_space<vmem>>) attributes {dimension_semantics = [#tpu.dimension_semantics<parallel>, #tpu.dimension_semantics<arbitrary>], iteration_bounds = array<i64: 1, 1>, scalar_prefetch = 0 : i64, scratch_operands = 2 : i64, tpu.core_type = #tpu.core_type<tc>, window_params = [{transform_indices = @transform_0, window_bounds = array<i64: 8, 16, 16>}, {transform_indices = @transform_1, window_bounds = array<i64: 1, 1>}, {transform_indices = @transform_2, window_bounds = array<i64: 1, 1>}]} {
    %c0_i32 = arith.constant 0 : i32
    %0 = arith.cmpi eq, %arg1, %c0_i32 : i32
    %1 = arith.extui %0 : i1 to i32
    %c0_i32_0 = arith.constant 0 : i32
    %2 = arith.cmpi ne, %1, %c0_i32_0 : i32
    scf.if %2 {
      %cst_14 = arith.constant 0.000000e+00 : f32
      %23 = vector.broadcast %cst_14 : f32 to vector<15x16xf32>
      %c0_15 = arith.constant 0 : index
      %c0_16 = arith.constant 0 : index
      %24 = vector.load %arg5[%c0_15, %c0_16] : memref<15x16xf32, #tpu.memory_space<vmem>>, vector<15x16xf32>
      tpu.vector_store %arg5[%c0_15, %c0_16], %23 {strides = array<i32>} : memref<15x16xf32, #tpu.memory_space<vmem>>, vector<15x16xf32>,
      %cst_17 = arith.constant 0.000000e+00 : f32
      %25 = vector.broadcast %cst_17 : f32 to vector<16x15xf32>
      %c0_18 = arith.constant 0 : index
      %c0_19 = arith.constant 0 : index
      %26 = vector.load %arg6[%c0_18, %c0_19] : memref<16x15xf32, #tpu.memory_space<vmem>>, vector<16x15xf32>
      tpu.vector_store %arg6[%c0_18, %c0_19], %25 {strides = array<i32>} : memref<16x15xf32, #tpu.memory_space<vmem>>, vector<16x15xf32>,
    } else {
    }
    %c0 = arith.constant 0 : index
    %c0_1 = arith.constant 0 : index
    %c0_2 = arith.constant 0 : index
    %3 = vector.load %arg2[%c0, %c0_1, %c0_2] : memref<8x16x16xf32, #tpu.memory_space<vmem>>, vector<8x16x16xf32>
    %4 = vector.extract_strided_slice %3 {offsets = [0, 1, 0], sizes = [8, 15, 16], strides = [1, 1, 1]} : vector<8x16x16xf32> to vector<8x15x16xf32>
    %5 = vector.extract_strided_slice %3 {offsets = [0, 0, 0], sizes = [8, 15, 16], strides = [1, 1, 1]} : vector<8x16x16xf32> to vector<8x15x16xf32>
    %6 = arith.subf %4, %5 : vector<8x15x16xf32>
    %7 = vector.extract_strided_slice %3 {offsets = [0, 0, 1], sizes = [8, 16, 15], strides = [1, 1, 1]} : vector<8x16x16xf32> to vector<8x16x15xf32>
    %8 = vector.extract_strided_slice %3 {offsets = [0, 0, 0], sizes = [8, 16, 15], strides = [1, 1, 1]} : vector<8x16x16xf32> to vector<8x16x15xf32>
    %9 = arith.subf %7, %8 : vector<8x16x15xf32>
    %c0_3 = arith.constant 0 : index
    %c0_4 = arith.constant 0 : index
    %10 = vector.load %arg5[%c0_3, %c0_4] : memref<15x16xf32, #tpu.memory_space<vmem>>, vector<15x16xf32>
    %11 = arith.mulf %6, %6 : vector<8x15x16xf32>
    %cst = arith.constant dense<0.000000e+00> : vector<15x16xf32>
    %12 = vector.multi_reduction <add>, %11, %cst [0] : vector<8x15x16xf32> to vector<15x16xf32>
    %13 = arith.addf %10, %12 : vector<15x16xf32>
    %c0_5 = arith.constant 0 : index
    %c0_6 = arith.constant 0 : index
    %14 = vector.load %arg5[%c0_5, %c0_6] : memref<15x16xf32, #tpu.memory_space<vmem>>, vector<15x16xf32>
    tpu.vector_store %arg5[%c0_5, %c0_6], %13 {strides = array<i32>} : memref<15x16xf32, #tpu.memory_space<vmem>>, vector<15x16xf32>,
    %c0_7 = arith.constant 0 : index
    %c0_8 = arith.constant 0 : index
    %15 = vector.load %arg6[%c0_7, %c0_8] : memref<16x15xf32, #tpu.memory_space<vmem>>, vector<16x15xf32>
    %16 = arith.mulf %9, %9 : vector<8x16x15xf32>
    %cst_9 = arith.constant dense<0.000000e+00> : vector<16x15xf32>
    %17 = vector.multi_reduction <add>, %16, %cst_9 [0] : vector<8x16x15xf32> to vector<16x15xf32>
    %18 = arith.addf %15, %17 : vector<16x15xf32>
    %c0_10 = arith.constant 0 : index
    %c0_11 = arith.constant 0 : index
    %19 = vector.load %arg6[%c0_10, %c0_11] : memref<16x15xf32, #tpu.memory_space<vmem>>, vector<16x15xf32>
    tpu.vector_store %arg6[%c0_10, %c0_11], %18 {strides = array<i32>} : memref<16x15xf32, #tpu.memory_space<vmem>>, vector<16x15xf32>,
    %c0_i32_12 = arith.constant 0 : i32
    %20 = arith.cmpi eq, %arg1, %c0_i32_12 : i32
    %21 = arith.extui %20 : i1 to i32
    %c0_i32_13 = arith.constant 0 : i32
    %22 = arith.cmpi ne, %21, %c0_i32_13 : i32
    scf.if %22 {
      %c0_14 = arith.constant 0 : index
      %c0_15 = arith.constant 0 : index
      %23 = vector.load %arg5[%c0_14, %c0_15] : memref<15x16xf32, #tpu.memory_space<vmem>>, vector<15x16xf32>
      %24 = vector.shape_cast %23 : vector<15x16xf32> to vector<1x15x16xf32>
      %cst_16 = arith.constant dense<0.000000e+00> : vector<1xf32>
      %25 = vector.multi_reduction <add>, %24, %cst_16 [1, 2] : vector<1x15x16xf32> to vector<1xf32>
      %26 = vector.shape_cast %25 : vector<1xf32> to vector<1x1x1xf32>
      %27 = vector.extract %26[0, 0, 0] : f32 from vector<1x1x1xf32>
      %c0_17 = arith.constant 0 : index
      %c0_18 = arith.constant 0 : index
      %28 = memref.load %arg3[%c0_17, %c0_18] : memref<1x1xf32, #tpu.memory_space<smem>>
      memref.store %27, %arg3[%c0_17, %c0_18] : memref<1x1xf32, #tpu.memory_space<smem>>
      %c0_19 = arith.constant 0 : index
      %c0_20 = arith.constant 0 : index
      %29 = vector.load %arg6[%c0_19, %c0_20] : memref<16x15xf32, #tpu.memory_space<vmem>>, vector<16x15xf32>
      %30 = vector.shape_cast %29 : vector<16x15xf32> to vector<1x16x15xf32>
      %cst_21 = arith.constant dense<0.000000e+00> : vector<1xf32>
      %31 = vector.multi_reduction <add>, %30, %cst_21 [1, 2] : vector<1x16x15xf32> to vector<1xf32>
      %32 = vector.shape_cast %31 : vector<1xf32> to vector<1x1x1xf32>
      %33 = vector.extract %32[0, 0, 0] : f32 from vector<1x1x1xf32>
      %c0_22 = arith.constant 0 : index
      %c0_23 = arith.constant 0 : index
      %34 = memref.load %arg4[%c0_22, %c0_23] : memref<1x1xf32, #tpu.memory_space<smem>>
      memref.store %33, %arg4[%c0_22, %c0_23] : memref<1x1xf32, #tpu.memory_space<smem>>
    } else {
    }
    return
  }
  func.func @transform_0(%arg0: i32, %arg1: i32) -> (i32, i32, i32) {
    %c1_i32 = arith.constant 1 : i32
    %0 = arith.muli %arg0, %c1_i32 : i32
    %1 = arith.addi %0, %arg1 : i32
    %c0_i32 = arith.constant 0 : i32
    %c0_i32_0 = arith.constant 0 : i32
    %c0_i32_1 = arith.constant 0 : i32
    return %1, %c0_i32, %c0_i32_0 : i32, i32, i32
  }
  func.func @transform_1(%arg0: i32, %arg1: i32) -> (i32, i32) {
    %c0_i32 = arith.constant 0 : i32
    %c0_i32_0 = arith.constant 0 : i32
    return %arg0, %c0_i32 : i32, i32
  }
  func.func @transform_2(%arg0: i32, %arg1: i32) -> (i32, i32) {
    %c0_i32 = arith.constant 0 : i32
    %c0_i32_0 = arith.constant 0 : i32
    return %arg0, %c0_i32 : i32, i32
  }
}

</mosaic_0001>

<bundles_post_ra>
// kernel: tpu_custom_call.1
= control target key start
LH: loop header
LB: loop body
LE: loop exit
PB: predicated region body
PF: predicated region fallthrough
CT: control target
= control target key end

     0   :  { %8 = vsyncpa [#allocation5], 0  ;;  %s670_s0 = inlined_call_operand.hbm [shape: f32[8,16,16], index: 0, kind: input, shape index: {}]   ;;  %s671_s1 = inlined_call_operand.hbm [shape: f32[1,1], index: 1, kind: output, shape index: {0}]   ;;  %s672_s2 = inlined_call_operand.hbm [shape: f32[1,1], index: 2, kind: output, shape index: {1}]  }
   0x1   :  { %9 = vsyncpa [#allocation6], 0 }
   0x2   :  { %10 = vsyncpa [#allocation9], 0  ;;  %s443_s9 = smov [#allocation4]   ;;  %s395_s13 = scalar_lea.hbm %s670_s0, 2048 }
   0x3   :  { %s21_s10 = sshll.u32 %s443_s9, 4  ;;  %p396_p0 = scmp.ne.s32.totalorder %s670_s0, %s395_s13  ;;  %s22_s10 = int_to_ptr.vmem [resolvable:$true] %s21_s10 }
   0x4   :  { %p399_p1 = scmp.lt.u32.totalorder %s395_s13, %s670_s0 }
   0x6   :  { %p401_p2 = pnand %p399_p1, %p396_p0 }
   0x8   :  { %404 = shalt.err (!%p401_p2)
}
   0x9   :  { %s405_s18 = scalar_lea.vmem %s22_s10, 2048  ;;  %p410_p4 = scmp.lt.s32.totalorder %s22_s10, %s22_s10 }
   0xa   :  { %p406_p3 = scmp.ne.s32.totalorder %s22_s10, %s405_s18  ;;  %p411_p5 = scmp.lt.s32.totalorder %s405_s18, %s405_s18 }
   0xc   :  { %p412_p6 = por %p411_p5, %p410_p4 }
   0xe   :  { %p413_p7 = pnand %p412_p6, %p406_p3 }
  0x10   :  { %416 = shalt.err (!%p413_p7)
}
  0x11   :  { %s444_s19 = smov 128   ;;  %s445_s20 = smov 8  }
  0x12   :  { %27 = dma.hbm_to_vmem [thread:$0]  %s670_s0, 2048, %s22_s10, [#allocation5], %s444_s19, %s444_s19, %s445_s20  }
  0x13   :  { %437 = dma.done.wait [#allocation5], 2048  }
  0x14   :  { %438 = vsyncadd [#allocation5], 4294965248  ;;  %vm37_vm0 = vcmask 130048   ;;  %v446_v0 = vmov 0.0   ;;  %v480_v1 = vld [vmem:[#allocation4 + $0x10] sm:$0xff]  ;;  %v482_v2 = vld [vmem:[#allocation4] sm:$0xff] }
  0x15   :  { %38 = vst.msk [vmem:[#allocation2] sm:$0xff] %vm37_vm0, %v446_v0  ;;  %v484_v3 = vld [vmem:[#allocation4 + $0x18] sm:$0xff]  ;;  %vm76_vm1 = vcmask 1040384   ;;  %s447_s23 = smov 1   ;;  %v80_v4 = vrot.slane %v480_v1, 7  ;;  %v77_v5 = vrot.slane %v482_v2, 7 }
  0x16   :  { %137 = vrot.lane.b32.xlu1 %v480_v1, %s447_s23  ;;  %133 = vrot.lane.b32.xlu0 %v482_v2, %s447_s23  ;;  %v81_v6 = vrot.slane %v484_v3, 7  ;;  %v493_v7 = vld [vmem:[#allocation4 + $0x8] sm:$0xff]  ;;  %v497_v9 = vld [vmem:[#allocation4 + $0x20] sm:$0xff]  ;;  %vm215_vm2 = vcmask 130049   ;;  %v502_v13 = vld [vmem:[#allocation4 + $0x38] sm:$0xff]  ;;  %vm41_vm3 = vcmask 121856  }
  0x17   :  { %v495_v8 = vld [vmem:[#allocation4 + $0x28] sm:$0xff]  ;;  %v78_v10 = vrot.slane %v493_v7, 7  ;;  %v83_v12 = vrot.slane %v497_v9, 7  ;;  %v119_v14 = vsub.f32 %v480_v1, %v80_v4  ;;  %v117_v15 = vsub.f32 %v482_v2, %v77_v5  ;;  %v512_v22 = vld [vmem:[#allocation4 + $0x30] sm:$0xff]  ;;  %v529_v40 = vld [vmem:[#allocation4 + $0x40] sm:$0xff]  ;;  %43 = vst.msk [vmem:[#allocation3 + $0x8] sm:$0xff] %vm41_vm3, %v446_v0 }
  0x18   :  { %v84_v11 = vrot.slane %v495_v8, 7  ;;  %v82_v16 = vsel %vm76_vm1, %v80_v4, %v81_v6  ;;  %v87_v17 = vrot.slane %v502_v13, 7  ;;  %v86_v26 = vrot.slane %v512_v22, 7  ;;  %v520_v27 = vld [vmem:[#allocation4 + $0x48] sm:$0xff]  ;;  %v539_v45 = vld [vmem:[#allocation4 + $0x58] sm:$0xff]  ;;  %v545_v54 = vld [vmem:[#allocation4 + $0x50] sm:$0xff] }
  0x19   :  { %v120_v18 = vsub.f32 %v484_v3, %v82_v16  ;;  %v79_v19 = vsel %vm76_vm1, %v77_v5, %v78_v10  ;;  %v121_v21 = vsub.f32 %v497_v9, %v83_v12  ;;  %v201_v23 = vmul.f32 %v119_v14, %v119_v14  ;;  %v547_v55 = vld [vmem:[#allocation4 + $0x68] sm:$0xff]  ;;  %v552_v60 = vld [vmem:[#allocation4 + $0x60] sm:$0xff]  ;;  %42 = vst.msk [vmem:[#allocation3] sm:$0xff] %vm41_vm3, %v446_v0  ;;  %s448_s0 = smov 127   ;;  %s417_s27 = scalar_lea.hbm %s671_s1, 16 }
  0x1a   :  { %v85_v20 = vsel %vm76_vm1, %v83_v12, %v84_v11  ;;  %v199_v24 = vmul.f32 %v117_v15, %v117_v15  ;;  %139 = vrot.lane.b32.xlu1 %v484_v3, %s447_s23  ;;  %135 = vrot.lane.b32.xlu0 %v493_v7, %s447_s23  ;;  %v118_v25 = vsub.f32 %v493_v7, %v79_v19  ;;  %v90_v31 = vrot.slane %v520_v27, 7  ;;  %p418_p8 = scmp.ne.s32.totalorder %s671_s1, %s417_s27  ;;  %p421_p9 = scmp.lt.u32.totalorder %s417_s27, %s671_s1 }
  0x1b   :  { %v202_v28 = vmul.f32 %v120_v18, %v120_v18  ;;  %v122_v29 = vsub.f32 %v495_v8, %v85_v20  ;;  %v203_v30 = vmul.f32 %v121_v21, %v121_v21  ;;  %v217_v32 = vsel %vm215_vm2, %v201_v23, 0.0  ;;  %v569_v21 = vld [vmem:[#allocation4 + $0x78] sm:$0xff] }
  0x1c   :  { %v216_v33 = vsel %vm215_vm2, %v199_v24, 0.0  ;;  %v200_v34 = vmul.f32 %v118_v25, %v118_v25  ;;  %v88_v35 = vsel %vm76_vm1, %v86_v26, %v87_v17  ;;  %v123_v42 = vsub.f32 %v512_v22, %v86_v26  ;;  %p423_p10 = pnand %p421_p9, %p418_p8 }
  0x1d   :  { %v218_v36 = vadd.f32 %v217_v32, %v216_v33  ;;  %v233_v37 = vsel %vm37_vm0, %v202_v28, 0.0  ;;  %v204_v38 = vmul.f32 %v122_v29, %v122_v29  ;;  %v219_v39 = vsel %vm215_vm2, %v203_v30, 0.0  ;;  %v576_v28 = vld [vmem:[#allocation4 + $0x70] sm:$0xff] }
  0x1e   :  { %v232_v41 = vsel %vm37_vm0, %v200_v34, 0.0  ;;  %143 = vrot.lane.b32.xlu1 %v495_v8, %s447_s23  ;;  %141 = vrot.lane.b32.xlu0 %v497_v9, %s447_s23  ;;  %v124_v43 = vsub.f32 %v502_v13, %v88_v35  ;;  %v89_v44 = vrot.slane %v529_v40, 7  ;;  %v93_v49 = vrot.slane %v539_v45, 7 }
  0x1f   :  { %v234_v46 = vadd.f32 %v233_v37, %v232_v41  ;;  %v235_v47 = vsel %vm37_vm0, %v204_v38, 0.0  ;;  %v220_v48 = vadd.f32 %v219_v39, %v218_v36  ;;  %v205_v50 = vmul.f32 %v123_v42, %v123_v42 }
  0x20   :  { %v206_v51 = vmul.f32 %v124_v43, %v124_v43  ;;  %v91_v52 = vsel %vm76_vm1, %v89_v44, %v90_v31  ;;  %v125_v53 = vsub.f32 %v529_v40, %v89_v44  ;;  %v92_v58 = vrot.slane %v545_v54, 7 }
  0x21   :  { %v236_v56 = vadd.f32 %v235_v47, %v234_v46  ;;  %v126_v57 = vsub.f32 %v520_v27, %v91_v52  ;;  %v96_v59 = vrot.slane %v547_v55, 7  ;;  %v221_v61 = vsel %vm215_vm2, %v205_v50, 0.0  ;;  %v197_v52 = vld [vmem:[#allocation2] sm:$0xff] }
  0x22   :  { %147 = vrot.lane.b32.xlu1 %v502_v13, %s447_s23  ;;  %v237_v62 = vsel %vm37_vm0, %v206_v51, 0.0  ;;  %145 = vrot.lane.b32.xlu0 %v512_v22, %s447_s23  ;;  %v207_v63 = vmul.f32 %v125_v53, %v125_v53  ;;  %v95_v4 = vrot.slane %v552_v60, 7  ;;  %v222_v5 = vadd.f32 %v221_v61, %v220_v48 }
  0x23   :  { %v238_v6 = vadd.f32 %v237_v62, %v236_v56  ;;  %v208_v10 = vmul.f32 %v126_v57, %v126_v57  ;;  %v94_v11 = vsel %vm76_vm1, %v92_v58, %v93_v49  ;;  %v127_v14 = vsub.f32 %v545_v54, %v92_v58 }
  0x24   :  { %v223_v12 = vsel %vm215_vm2, %v207_v63, 0.0  ;;  %v128_v15 = vsub.f32 %v539_v45, %v94_v11  ;;  %v97_v16 = vsel %vm76_vm1, %v95_v4, %v96_v59  ;;  %v129_v19 = vsub.f32 %v552_v60, %v95_v4 }
  0x25   :  { %v239_v17 = vsel %vm37_vm0, %v208_v10, 0.0  ;;  %v224_v18 = vadd.f32 %v223_v12, %v222_v5  ;;  %v130_v20 = vsub.f32 %v547_v55, %v97_v16  ;;  %v209_v24 = vmul.f32 %v127_v14, %v127_v14 }
  0x26   :  { %151 = vrot.lane.b32.xlu1 %v520_v27, %s447_s23  ;;  %149 = vrot.lane.b32.xlu0 %v529_v40, %s447_s23  ;;  %v240_v23 = vadd.f32 %v239_v17, %v238_v6  ;;  %v210_v25 = vmul.f32 %v128_v15, %v128_v15  ;;  %v99_v26 = vrot.slane %v569_v21, 7  ;;  %v211_v29 = vmul.f32 %v129_v19, %v129_v19 }
  0x27   :  { %v212_v30 = vmul.f32 %v130_v20, %v130_v20  ;;  %v98_v31 = vrot.slane %v576_v28, 7  ;;  %v225_v32 = vsel %vm215_vm2, %v209_v24, 0.0  ;;  %vm249_vm4 = vcmask 1046528  }
  0x28   :  { %v241_v33 = vsel %vm37_vm0, %v210_v25, 0.0  ;;  %v226_v34 = vadd.f32 %v225_v32, %v224_v18  ;;  %v227_v36 = vsel %vm215_vm2, %v211_v29, 0.0  ;;  %vm39_vm5 = vcmask 129024  }
  0x29   :  { %v242_v35 = vadd.f32 %v241_v33, %v240_v23  ;;  %v243_v37 = vsel %vm37_vm0, %v212_v30, 0.0  ;;  %v100_v38 = vsel %vm76_vm1, %v98_v31, %v99_v26  ;;  %v131_v39 = vsub.f32 %v576_v28, %v98_v31  ;;  %40 = vst.msk [vmem:[#allocation2 + $0x8] sm:$0x7f] %vm39_vm5, %v446_v0 }
  0x2a   :  { %155 = vrot.lane.b32.xlu1 %v539_v45, %s447_s23  ;;  %153 = vrot.lane.b32.xlu0 %v545_v54, %s447_s23  ;;  %v228_v41 = vadd.f32 %v227_v36, %v226_v34  ;;  %v132_v42 = vsub.f32 %v569_v21, %v100_v38  ;;  %vm278_vm6 = vcmask 130056  }
  0x2b   :  { %v244_v43 = vadd.f32 %v243_v37, %v242_v35  ;;  %v213_v44 = vmul.f32 %v131_v39, %v131_v39 }
  0x2c   :  { %v214_v46 = vmul.f32 %v132_v42, %v132_v42 }
  0x2d   :  { %v229_v47 = vsel %vm215_vm2, %v213_v44, 0.0 }
  0x2e   :  { %159 = vrot.lane.b32.xlu1 %v547_v55, %s447_s23  ;;  %157 = vrot.lane.b32.xlu0 %v552_v60, %s447_s23  ;;  %v245_v48 = vsel %vm37_vm0, %v214_v46, 0.0  ;;  %v230_v49 = vadd.f32 %v229_v47, %v228_v41 }
  0x2f   :  { %v246_v50 = vadd.f32 %v245_v48, %v244_v43 }
  0x30   :  { %v250_v51 = vrot.slane %v230_v49, 1 }
  0x31   :  { %v251_v53 = vrot.slane %v246_v50, 1 }
  0x32   :  { %163 = vrot.lane.b32.xlu1 %v569_v21, %s447_s23  ;;  %161 = vrot.lane.b32.xlu0 %v576_v28, %s447_s23 }
  0x33   :  { %v252_v56 = vsel %vm249_vm4, %v250_v51, %v251_v53 }
  0x34   :  { %v255_v57 = vadd.f32 %v252_v56, %v197_v52 }
  0x36   :  { %257 = vst.msk [vmem:[#allocation2] sm:$0xff] %vm37_vm0, %v255_v57 }
  0x88   :  { %v138_v58 = vpop.permute.xlu1 %137  ;;  %v134_v59 = vpop.permute.xlu0 %133 }
  0x89   :  { %v183_v5 = vsub.f32 %v480_v1, %v138_v58  ;;  %v181_v6 = vsub.f32 %v482_v2, %v134_v59 }
  0x8b   :  { %v264_v17 = vmul.f32 %v183_v5, %v183_v5  ;;  %v262_v18 = vmul.f32 %v181_v6, %v181_v6 }
  0x8c   :  { %v140_v61 = vpop.permute.xlu1 %139  ;;  %v136_v62 = vpop.permute.xlu0 %135 }
  0x8d   :  { %v184_v10 = vsub.f32 %v484_v3, %v140_v61  ;;  %v182_v11 = vsub.f32 %v493_v7, %v136_v62  ;;  %v198_v7 = vld [vmem:[#allocation2 + $0x8] sm:$0x7f]  ;;  %v280_v25 = vsel %vm278_vm6, %v264_v17, 0.0  ;;  %v279_v26 = vsel %vm278_vm6, %v262_v18, 0.0 }
  0x8e   :  { %v256_v29 = vadd.f32 %v251_v53, %v198_v7  ;;  %v281_v38 = vadd.f32 %v280_v25, %v279_v26 }
  0x8f   :  { %v265_v19 = vmul.f32 %v184_v10, %v184_v10  ;;  %v263_v20 = vmul.f32 %v182_v11, %v182_v11 }
  0x90   :  { %v144_v63 = vpop.permute.xlu1 %143  ;;  %v142_v4 = vpop.permute.xlu0 %141  ;;  %259 = vst.msk [vmem:[#allocation2 + $0x8] sm:$0x7f] %vm39_vm5, %v256_v29 }
  0x91   :  { %v186_v12 = vsub.f32 %v495_v8, %v144_v63  ;;  %v185_v14 = vsub.f32 %v497_v9, %v142_v4  ;;  %v295_v30 = vsel %vm278_vm6, %v265_v19, 0.0 }
  0x93   :  { %v267_v2 = vmul.f32 %v186_v12, %v186_v12  ;;  %v266_v23 = vmul.f32 %v185_v14, %v185_v14 }
  0x94   :  { %v148_v15 = vpop.permute.xlu1 %147  ;;  %v146_v16 = vpop.permute.xlu0 %145 }
  0x95   :  { %v188_v0 = vsub.f32 %v502_v13, %v148_v15  ;;  %v187_v1 = vsub.f32 %v512_v22, %v146_v16  ;;  %v294_v13 = vsel %vm278_vm6, %v263_v20, 0.0  ;;  %v297_v32 = vsel %vm278_vm6, %v267_v2, 0.0 }
  0x96   :  { %v282_v33 = vsel %vm278_vm6, %v266_v23, 0.0  ;;  %v296_v39 = vadd.f32 %v295_v30, %v294_v13  ;;  %v261_v23 = vld [vmem:[#allocation3 + $0x8] sm:$0xff] }
  0x97   :  { %v269_v31 = vmul.f32 %v188_v0, %v188_v0  ;;  %v268_v22 = vmul.f32 %v187_v1, %v187_v1  ;;  %v283_v47 = vadd.f32 %v282_v33, %v281_v38  ;;  %v325_v0 = vld [vmem:[#allocation2] sm:$0xff]  ;;  %v326_v1 = vld [vmem:[#allocation2 + $0x8] sm:$0x7f] }
  0x98   :  { %v152_v3 = vpop.permute.xlu1 %151  ;;  %v150_v24 = vpop.permute.xlu0 %149  ;;  %v298_v46 = vadd.f32 %v297_v32, %v296_v39 }
  0x99   :  { %v190_v8 = vsub.f32 %v520_v27, %v152_v3  ;;  %v189_v9 = vsub.f32 %v529_v40, %v150_v24  ;;  %v299_v41 = vsel %vm278_vm6, %v269_v31, 0.0  ;;  %v284_v42 = vsel %vm278_vm6, %v268_v22, 0.0  ;;  %v260_v3 = vld [vmem:[#allocation3] sm:$0xff] }
  0x9a   :  { %v300_v52 = vadd.f32 %v299_v41, %v298_v46  ;;  %v285_v53 = vadd.f32 %v284_v42, %v283_v47 }
  0x9b   :  { %v271_v27 = vmul.f32 %v190_v8, %v190_v8  ;;  %v270_v40 = vmul.f32 %v189_v9, %v189_v9 }
  0x9c   :  { %v156_v34 = vpop.permute.xlu1 %155  ;;  %v154_v35 = vpop.permute.xlu0 %153 }
  0x9d   :  { %v192_v36 = vsub.f32 %v539_v45, %v156_v34  ;;  %v191_v37 = vsub.f32 %v545_v54, %v154_v35  ;;  %v301_v50 = vsel %vm278_vm6, %v271_v27, 0.0  ;;  %v286_v51 = vsel %vm278_vm6, %v270_v40, 0.0 }
  0x9e   :  { %v302_v61 = vadd.f32 %v301_v50, %v300_v52  ;;  %v287_v62 = vadd.f32 %v286_v51, %v285_v53 }
  0x9f   :  { %v273_v43 = vmul.f32 %v192_v36, %v192_v36  ;;  %v272_v44 = vmul.f32 %v191_v37, %v191_v37 }
  0xa0   :  { %v160_v48 = vpop.permute.xlu1 %159  ;;  %v158_v49 = vpop.permute.xlu0 %157 }
  0xa1   :  { %v194_v45 = vsub.f32 %v547_v55, %v160_v48  ;;  %v193_v54 = vsub.f32 %v552_v60, %v158_v49  ;;  %v303_v56 = vsel %vm278_vm6, %v273_v43, 0.0  ;;  %v288_v57 = vsel %vm278_vm6, %v272_v44, 0.0 }
  0xa2   :  { %v304_v10 = vadd.f32 %v303_v56, %v302_v61  ;;  %v289_v11 = vadd.f32 %v288_v57, %v287_v62 }
  0xa3   :  { %v275_v58 = vmul.f32 %v194_v45, %v194_v45  ;;  %v274_v59 = vmul.f32 %v193_v54, %v193_v54 }
  0xa4   :  { %v164_v63 = vpop.permute.xlu1 %163  ;;  %v162_v4 = vpop.permute.xlu0 %161 }
  0xa5   :  { %v305_v5 = vsel %vm278_vm6, %v275_v58, 0.0  ;;  %v290_v6 = vsel %vm278_vm6, %v274_v59, 0.0  ;;  %v196_v55 = vsub.f32 %v569_v21, %v164_v63  ;;  %v195_v60 = vsub.f32 %v576_v28, %v162_v4 }
  0xa6   :  { %v306_v15 = vadd.f32 %v305_v5, %v304_v10  ;;  %v291_v16 = vadd.f32 %v290_v6, %v289_v11  ;;  %v327_v21 = vsel %vm37_vm0, %v325_v0, 0.0  ;;  %v328_v28 = vsel %vm39_vm5, %v326_v1, 0.0 }
  0xa7   :  { %v277_v12 = vmul.f32 %v196_v55, %v196_v55  ;;  %v276_v14 = vmul.f32 %v195_v60, %v195_v60  ;;  %v329_v2 = vadd.f32 %v328_v28, %v327_v21 }
  0xa9   :  { %v307_v17 = vsel %vm278_vm6, %v277_v12, 0.0  ;;  %v292_v18 = vsel %vm278_vm6, %v276_v14, 0.0 }
  0xaa   :  { %v308_v19 = vadd.f32 %v307_v17, %v306_v15  ;;  %v293_v20 = vadd.f32 %v292_v18, %v291_v16 }
  0xac   :  { %313 = vrot.lane.b32.xlu1 %v308_v19, %s448_s0  ;;  %311 = vrot.lane.b32.xlu0 %v293_v20, %s448_s0 }
  0xcb   :  { %330 = vadd.xlane.f32.xlu0 %v329_v2 }
 0x11e   :  { %v314_v24 = vpop.permute.xlu1 %313  ;;  %v312_v7 = vpop.permute.xlu0 %311 }
 0x11f   :  { %v318_v8 = vadd.f32 %v314_v24, %v261_v23  ;;  %v317_v9 = vadd.f32 %v312_v7, %v260_v3 }
 0x121   :  { %321 = vst.msk [vmem:[#allocation3 + $0x8] sm:$0xff] %vm41_vm3, %v318_v8  ;;  %320 = vst.msk [vmem:[#allocation3] sm:$0xff] %vm41_vm3, %v317_v9 }
 0x128   :  { %v341_v25 = vld [vmem:[#allocation3] sm:$0xff]  ;;  %v342_v26 = vld [vmem:[#allocation3 + $0x8] sm:$0xff] }
 0x129   :  { %v343_v29 = vsel %vm41_vm3, %v341_v25, 0.0  ;;  %v344_v30 = vsel %vm41_vm3, %v342_v26, 0.0 }
 0x12a   :  { %v345_v13 = vadd.f32 %v344_v30, %v343_v29 }
 0x12c   :  { %346 = vadd.xlane.f32.xlu1 %v345_v13 }
 0x158   :  { %v331_v31 = vpop.xlane.xlu0 %330 }
 0x159   :  { %v332_v22 = vrot.slane %v331_v31, 4 }
 0x15b   :  { %v333_v32 = vadd.f32 %v332_v22, %v331_v31 }
 0x15d   :  { %v334_v33 = vrot.slane %v333_v32, 2 }
 0x15f   :  { %v335_v34 = vadd.f32 %v334_v33, %v333_v32 }
 0x161   :  { %v336_v35 = vrot.slane %v335_v34, 1 }
 0x163   :  { %v337_v27 = vadd.f32 %v336_v35, %v335_v34 }
 0x165   :  { %383 = vpush %v337_v27 }
 0x196   :  { %s384_s24 = spop %383 }
 0x197   :  { %340 = sst [smem:[#allocation7]] %s384_s24 }
 0x198   :  { %426 = shalt.err (!%p423_p10)
}
 0x199   :  { %s449_s4 = smov [#allocation7]   ;;  %s427_s10 = scalar_lea.hbm %s672_s2, 16 }
 0x19a   :  { %364 = dma.smem_to_hbm %s449_s4, 16, %s671_s1, [#allocation6]  }
 0x19b   :  { %p428_p11 = scmp.ne.s32.totalorder %s672_s2, %s427_s10  ;;  %p431_p12 = scmp.lt.u32.totalorder %s427_s10, %s672_s2 }
 0x19d   :  { %p433_p13 = pnand %p431_p12, %p428_p11 }
 0x1b9   :  { %v347_v40 = vpop.xlane.xlu1 %346 }
 0x1ba   :  { %v348_v36 = vrot.slane %v347_v40, 4 }
 0x1bc   :  { %v349_v37 = vadd.f32 %v348_v36, %v347_v40 }
 0x1be   :  { %v350_v38 = vrot.slane %v349_v37, 2 }
 0x1c0   :  { %v351_v39 = vadd.f32 %v350_v38, %v349_v37 }
 0x1c2   :  { %v352_v41 = vrot.slane %v351_v39, 1 }
 0x1c4   :  { %v353_v42 = vadd.f32 %v352_v41, %v351_v39 }
 0x1c6   :  { %385 = vpush %v353_v42 }
 0x1f7   :  { %s386_s7 = spop %385 }
 0x1f8   :  { %356 = sst [smem:[#allocation8]] %s386_s7 }
 0x1f9   :  { %436 = shalt.err (!%p433_p13)
}
 0x1fa   :  { %s450_s14 = smov [#allocation8]  }
 0x1fb   :  { %372 = dma.smem_to_hbm %s450_s14, 16, %s672_s2, [#allocation9]  }
 0x1fc   :  { %439 = dma.done.wait [#allocation6], 16  }
 0x1fd   :  { %440 = vsyncadd [#allocation6], 4294967280 }
 0x1fe   :  { %441 = dma.done.wait [#allocation9], 16  }
 0x1ff   :  { %442 = vsyncadd [#allocation9], 4294967280 }
 0x200   :  { %379 = sfence }
 0x201   :  { %380 = vsyncpa [#allocation5], 1 }
 0x202   :  { %381 = vsyncpa [#allocation6], 1 }
 0x203   :  { %382 = vsyncpa [#allocation9], 1 }

</bundles_post_ra>
